<compile_context>
chip_gen: v5e
topology: v5e:2x2
jax: 0.10.0
libtpu: 0.0.40
codegen_flags: <defaults>
</compile_context>

<pallas_src>
import functools

import jax
import jax.numpy as jnp
from jax.experimental import pallas as pl
from jax.experimental.pallas import tpu as pltpu


def _sobel_plane(x, top, bot):
    """Sobel |gx|+|gy| on one (h, w) f32 plane.

    `top` / `bot` are (1, w) rows just above / below this tile (already zeroed
    when the tile touches the image border), matching F.conv2d zero padding.
    """
    h, w = x.shape
    row_ids = jax.lax.broadcasted_iota(jnp.int32, (h, w), 0)
    col_ids = jax.lax.broadcasted_iota(jnp.int32, (h, w), 1)

    # Vertical neighbors (sublane rolls + boundary-row substitution).
    up = jnp.where(row_ids == 0, top, pltpu.roll(x, 1, 0))          # x[i-1, j]
    dn = jnp.where(row_ids == h - 1, bot, pltpu.roll(x, h - 1, 0))  # x[i+1, j]

    # Separable Sobel: vertical combines first.
    v = up + 2.0 * x + dn   # vertical [1, 2, 1]
    d = up - dn             # vertical [1, 0, -1]

    # Horizontal +/-1 shifts (lane rolls, zero at the image edge).
    v_l = jnp.where(col_ids == 0, 0.0, pltpu.roll(v, 1, 1))          # v[i, j-1]
    v_r = jnp.where(col_ids == w - 1, 0.0, pltpu.roll(v, w - 1, 1))  # v[i, j+1]
    d_l = jnp.where(col_ids == 0, 0.0, pltpu.roll(d, 1, 1))
    d_r = jnp.where(col_ids == w - 1, 0.0, pltpu.roll(d, w - 1, 1))

    gx = v_r - v_l               # horizontal [-1, 0, 1]  -> kernelx
    gy = d_l + 2.0 * d + d_r     # horizontal [ 1, 2, 1]  -> kernely
    return jnp.abs(gx) + jnp.abs(gy)


def _sobelxy_kernel_single(xc_ref, o_ref):
    """Whole-H-per-step variant (no halo inputs needed: borders are zero)."""
    b_tile, _, w = o_ref.shape
    zero = jnp.zeros((1, w), jnp.float32)
    for b in range(b_tile):
        x = xc_ref[b].astype(jnp.float32)
        o_ref[b] = _sobel_plane(x, zero, zero).astype(o_ref.dtype)


def _sobelxy_kernel_tiled(xc_ref, xt_ref, xb_ref, o_ref, *, hb):
    """H-tiled variant: xt_ref / xb_ref carry the rows just above / below the tile."""
    hi = pl.program_id(1)
    nh = pl.num_programs(1)
    top_valid = (hi > 0).astype(jnp.float32)        # 0 at the top image border
    bot_valid = (hi < nh - 1).astype(jnp.float32)   # 0 at the bottom image border
    b_tile = o_ref.shape[0]
    for b in range(b_tile):
        x = xc_ref[b].astype(jnp.float32)
        top = xt_ref[b, hb - 1:hb, :].astype(jnp.float32) * top_valid  # row h*H_TILE - 1
        bot = xb_ref[b, 0:1, :].astype(jnp.float32) * bot_valid        # row (h+1)*H_TILE
        o_ref[b] = _sobel_plane(x, top, bot).astype(o_ref.dtype)


def _auto_tiles(B, H, W, itemsize):
    """Pick (b_tile, h_tile) keeping per-block footprint small (v7x-safe)."""
    plane_bytes = H * W * itemsize
    if plane_bytes <= 256 * 1024:
        # Small planes: batch several per grid step to amortize step overhead.
        b_tile = max(d for d in range(1, min(B, 8) + 1) if B % d == 0)
    else:
        b_tile = 1

    budget = 2 * 1024 * 1024  # per input block (well under 32 MiB scoped VMEM w/ 2x buffering)
    if b_tile * H * W * itemsize <= budget or H % 8 != 0:
        # TODO(synk): very large planes whose H has no multiple-of-8 divisor fall back to
        # a single whole-H block and may hit the VMEM limit.
        h_tile = H
    else:
        h_tile = H
        for cand in (1024, 512, 256, 128, 64, 32, 16, 8):
            if H % cand == 0 and b_tile * cand * W * itemsize <= budget:
                h_tile = cand
                break
    return b_tile, h_tile


def sobelxy(x, *, b_tile=None, h_tile=None):
    """Pallas equivalent of Sobelxy.forward. x: (N, C, H, W), C == 1."""
    N, C, H, W = x.shape
    assert C == 1, "Sobelxy's conv weight is [1,1,3,3]; input must have 1 channel."
    B = N * C
    x3 = x.reshape(B, H, W)
    itemsize = jnp.dtype(x.dtype).itemsize

    auto_b, auto_h = _auto_tiles(B, H, W, itemsize)
    b_tile = auto_b if b_tile is None else b_tile
    h_tile = auto_h if h_tile is None else h_tile
    assert B % b_tile == 0, "b_tile must divide N*C"
    assert H % h_tile == 0 and (h_tile == H or h_tile % 8 == 0), "bad h_tile"

    n_b = B // b_tile
    n_h = H // h_tile
    hb = min(8, H)                 # halo block height (full H if H < 8)
    n_hb = pl.cdiv(H, hb)          # number of halo-sized blocks along H
    hstride = h_tile // hb if h_tile % hb == 0 else 1

    center_spec = pl.BlockSpec((b_tile, h_tile, W), lambda b, h: (b, h, 0))
    out_spec = pl.BlockSpec((b_tile, h_tile, W), lambda b, h: (b, h, 0))

    if n_h == 1:
        kernel = _sobelxy_kernel_single
        in_specs = [center_spec]
        operands = (x3,)
    else:
        kernel = functools.partial(_sobelxy_kernel_tiled, hb=hb)
        # Tiny 8-row halo blocks of the same array: the block containing row h*h_tile-1
        # (its last row) and the block starting at row (h+1)*h_tile (its first row).
        top_spec = pl.BlockSpec(
            (b_tile, hb, W),
            lambda b, h: (b, jnp.maximum(h * hstride - 1, 0), 0))
        bot_spec = pl.BlockSpec(
            (b_tile, hb, W),
            lambda b, h: (b, jnp.minimum((h + 1) * hstride, n_hb - 1), 0))
        in_specs = [center_spec, top_spec, bot_spec]
        operands = (x3, x3, x3)

    out = pl.pallas_call(
        kernel,
        out_shape=jax.ShapeDtypeStruct((B, H, W), x.dtype),
        grid=(n_b, n_h),
        in_specs=in_specs,
        out_specs=out_spec,
        compiler_params=pltpu.CompilerParams(
            dimension_semantics=("parallel", "parallel"),
            vmem_limit_bytes=32 * 1024 * 1024,
        ),
    )(*operands)
    return out.reshape(N, C, H, W)


def _reference(x):
    """Pure-JAX reference mirroring F.conv2d with the fixed Sobel weights."""
    kernelx = jnp.array([[-1., 0., 1.], [-2., 0., 2.], [-1., 0., 1.]],
                        dtype=jnp.float32).reshape(1, 1, 3, 3)
    kernely = jnp.array([[1., 2., 1.], [0., 0., 0.], [-1., -2., -1.]],
                        dtype=jnp.float32).reshape(1, 1, 3, 3)
    dn = jax.lax.conv_dimension_numbers(x.shape, kernelx.shape,
                                        ("NCHW", "OIHW", "NCHW"))
    sx = jax.lax.conv_general_dilated(x, kernelx, (1, 1), ((1, 1), (1, 1)),
                                      dimension_numbers=dn)
    sy = jax.lax.conv_general_dilated(x, kernely, (1, 1), ((1, 1), (1, 1)),
                                      dimension_numbers=dn)
    return jnp.abs(sx) + jnp.abs(sy)


if __name__ == "__main__":
    k1, k2 = jax.random.split(jax.random.PRNGKey(0))

    # Small shape implied by the module (conv in_channels == 1): batched-plane path.
    x = jax.random.normal(k1, (2, 1, 16, 16), dtype=jnp.float32)
    out = sobelxy(x)
    jax.block_until_ready(out)
    ref = _reference(x)
    assert out.shape == ref.shape == (2, 1, 16, 16)
    assert jnp.allclose(out, ref, atol=1e-4, rtol=1e-5), "mismatch vs reference (small)"

    # Exercise the H-tiled + halo path on a modest lane-dense plane (forced h_tile).
    x2 = jax.random.normal(k2, (1, 1, 64, 128), dtype=jnp.float32)
    out2 = sobelxy(x2, b_tile=1, h_tile=16)
    jax.block_until_ready(out2)
    ref2 = _reference(x2)
    assert jnp.allclose(out2, ref2, atol=1e-4, rtol=1e-5), "mismatch vs reference (tiled)"

    print("KERNEL_OK")
</pallas_src>

<mosaic_0001>
module attributes {stable_mosaic.version = 11 : i64} {
  func.func @_sobelxy_kernel_single(%arg0: i32, %arg1: i32, %arg2: memref<2x16x16xf32, #tpu.memory_space<vmem>>, %arg3: memref<2x16x16xf32, #tpu.memory_space<vmem>>) attributes {dimension_semantics = [#tpu.dimension_semantics<parallel>, #tpu.dimension_semantics<parallel>], iteration_bounds = array<i64: 1, 1>, scalar_prefetch = 0 : i64, scratch_operands = 0 : i64, tpu.core_type = #tpu.core_type<tc>, window_params = [{transform_indices = @transform_0, window_bounds = array<i64: 2, 16, 16>}, {transform_indices = @transform_1, window_bounds = array<i64: 2, 16, 16>}]} {
    %cst = arith.constant 0.000000e+00 : f32
    %0 = vector.broadcast %cst : f32 to vector<1x16xf32>
    %c0 = arith.constant 0 : index
    %c0_0 = arith.constant 0 : index
    %c0_1 = arith.constant 0 : index
    %1 = vector.load %arg2[%c0, %c0_0, %c0_1] : memref<2x16x16xf32, #tpu.memory_space<vmem>>, vector<1x16x16xf32>
    %2 = vector.shape_cast %1 : vector<1x16x16xf32> to vector<16x16xf32>
    %3 = tpu.iota {dimensions = array<i32: 0>} : vector<16x16xi32>
    %4 = tpu.iota {dimensions = array<i32: 1>} : vector<16x16xi32>
    %c0_i32 = arith.constant 0 : i32
    %5 = vector.broadcast %c0_i32 : i32 to vector<16x16xi32>
    %6 = arith.cmpi eq, %3, %5 : vector<16x16xi32>
    %c1_i32 = arith.constant 1 : i32
    %7 = tpu.dynamic_rotate %2 by %c1_i32 dim 0 : vector<16x16xf32>, i32 -> vector<16x16xf32>
    %8 = vector.shape_cast %0 : vector<1x16xf32> to vector<1x16xf32>
    %9 = vector.broadcast %8 : vector<1x16xf32> to vector<16x16xf32>
    %10 = arith.select %6, %9, %7 : vector<16x16xi1>, vector<16x16xf32>
    %c15_i32 = arith.constant 15 : i32
    %11 = vector.broadcast %c15_i32 : i32 to vector<16x16xi32>
    %12 = arith.cmpi eq, %3, %11 : vector<16x16xi32>
    %c15_i32_2 = arith.constant 15 : i32
    %13 = tpu.dynamic_rotate %2 by %c15_i32_2 dim 0 : vector<16x16xf32>, i32 -> vector<16x16xf32>
    %14 = vector.shape_cast %0 : vector<1x16xf32> to vector<1x16xf32>
    %15 = vector.broadcast %14 : vector<1x16xf32> to vector<16x16xf32>
    %16 = arith.select %12, %15, %13 : vector<16x16xi1>, vector<16x16xf32>
    %cst_3 = arith.constant 2.000000e+00 : f32
    %17 = vector.broadcast %cst_3 : f32 to vector<16x16xf32>
    %18 = arith.mulf %17, %2 : vector<16x16xf32>
    %19 = arith.addf %10, %18 : vector<16x16xf32>
    %20 = arith.addf %19, %16 : vector<16x16xf32>
    %21 = arith.subf %10, %16 : vector<16x16xf32>
    %c0_i32_4 = arith.constant 0 : i32
    %22 = vector.broadcast %c0_i32_4 : i32 to vector<16x16xi32>
    %23 = arith.cmpi eq, %4, %22 : vector<16x16xi32>
    %c1_i32_5 = arith.constant 1 : i32
    %24 = tpu.dynamic_rotate %20 by %c1_i32_5 dim 1 : vector<16x16xf32>, i32 -> vector<16x16xf32>
    %cst_6 = arith.constant 0.000000e+00 : f32
    %25 = vector.broadcast %cst_6 : f32 to vector<16x16xf32>
    %26 = arith.select %23, %25, %24 : vector<16x16xi1>, vector<16x16xf32>
    %c15_i32_7 = arith.constant 15 : i32
    %27 = vector.broadcast %c15_i32_7 : i32 to vector<16x16xi32>
    %28 = arith.cmpi eq, %4, %27 : vector<16x16xi32>
    %c15_i32_8 = arith.constant 15 : i32
    %29 = tpu.dynamic_rotate %20 by %c15_i32_8 dim 1 : vector<16x16xf32>, i32 -> vector<16x16xf32>
    %cst_9 = arith.constant 0.000000e+00 : f32
    %30 = vector.broadcast %cst_9 : f32 to vector<16x16xf32>
    %31 = arith.select %28, %30, %29 : vector<16x16xi1>, vector<16x16xf32>
    %c0_i32_10 = arith.constant 0 : i32
    %32 = vector.broadcast %c0_i32_10 : i32 to vector<16x16xi32>
    %33 = arith.cmpi eq, %4, %32 : vector<16x16xi32>
    %c1_i32_11 = arith.constant 1 : i32
    %34 = tpu.dynamic_rotate %21 by %c1_i32_11 dim 1 : vector<16x16xf32>, i32 -> vector<16x16xf32>
    %cst_12 = arith.constant 0.000000e+00 : f32
    %35 = vector.broadcast %cst_12 : f32 to vector<16x16xf32>
    %36 = arith.select %33, %35, %34 : vector<16x16xi1>, vector<16x16xf32>
    %c15_i32_13 = arith.constant 15 : i32
    %37 = vector.broadcast %c15_i32_13 : i32 to vector<16x16xi32>
    %38 = arith.cmpi eq, %4, %37 : vector<16x16xi32>
    %c15_i32_14 = arith.constant 15 : i32
    %39 = tpu.dynamic_rotate %21 by %c15_i32_14 dim 1 : vector<16x16xf32>, i32 -> vector<16x16xf32>
    %cst_15 = arith.constant 0.000000e+00 : f32
    %40 = vector.broadcast %cst_15 : f32 to vector<16x16xf32>
    %41 = arith.select %38, %40, %39 : vector<16x16xi1>, vector<16x16xf32>
    %42 = arith.subf %31, %26 : vector<16x16xf32>
    %cst_16 = arith.constant 2.000000e+00 : f32
    %43 = vector.broadcast %cst_16 : f32 to vector<16x16xf32>
    %44 = arith.mulf %43, %21 : vector<16x16xf32>
    %45 = arith.addf %36, %44 : vector<16x16xf32>
    %46 = arith.addf %45, %41 : vector<16x16xf32>
    %47 = math.absf %42 : vector<16x16xf32>
    %48 = math.absf %46 : vector<16x16xf32>
    %49 = arith.addf %47, %48 : vector<16x16xf32>
    %c0_17 = arith.constant 0 : index
    %c0_18 = arith.constant 0 : index
    %c0_19 = arith.constant 0 : index
    %50 = vector.load %arg3[%c0_17, %c0_18, %c0_19] : memref<2x16x16xf32, #tpu.memory_space<vmem>>, vector<1x16x16xf32>
    %51 = vector.shape_cast %50 : vector<1x16x16xf32> to vector<16x16xf32>
    %52 = vector.shape_cast %49 : vector<16x16xf32> to vector<1x16x16xf32>
    tpu.vector_store %arg3[%c0_17, %c0_18, %c0_19], %52 {strides = array<i32>} : memref<2x16x16xf32, #tpu.memory_space<vmem>>, vector<1x16x16xf32>,
    %c1 = arith.constant 1 : index
    %c0_20 = arith.constant 0 : index
    %c0_21 = arith.constant 0 : index
    %53 = vector.load %arg2[%c1, %c0_20, %c0_21] : memref<2x16x16xf32, #tpu.memory_space<vmem>>, vector<1x16x16xf32>
    %54 = vector.shape_cast %53 : vector<1x16x16xf32> to vector<16x16xf32>
    %55 = tpu.iota {dimensions = array<i32: 0>} : vector<16x16xi32>
    %56 = tpu.iota {dimensions = array<i32: 1>} : vector<16x16xi32>
    %c0_i32_22 = arith.constant 0 : i32
    %57 = vector.broadcast %c0_i32_22 : i32 to vector<16x16xi32>
    %58 = arith.cmpi eq, %55, %57 : vector<16x16xi32>
    %c1_i32_23 = arith.constant 1 : i32
    %59 = tpu.dynamic_rotate %54 by %c1_i32_23 dim 0 : vector<16x16xf32>, i32 -> vector<16x16xf32>
    %60 = vector.shape_cast %0 : vector<1x16xf32> to vector<1x16xf32>
    %61 = vector.broadcast %60 : vector<1x16xf32> to vector<16x16xf32>
    %62 = arith.select %58, %61, %59 : vector<16x16xi1>, vector<16x16xf32>
    %c15_i32_24 = arith.constant 15 : i32
    %63 = vector.broadcast %c15_i32_24 : i32 to vector<16x16xi32>
    %64 = arith.cmpi eq, %55, %63 : vector<16x16xi32>
    %c15_i32_25 = arith.constant 15 : i32
    %65 = tpu.dynamic_rotate %54 by %c15_i32_25 dim 0 : vector<16x16xf32>, i32 -> vector<16x16xf32>
    %66 = vector.shape_cast %0 : vector<1x16xf32> to vector<1x16xf32>
    %67 = vector.broadcast %66 : vector<1x16xf32> to vector<16x16xf32>
    %68 = arith.select %64, %67, %65 : vector<16x16xi1>, vector<16x16xf32>
    %cst_26 = arith.constant 2.000000e+00 : f32
    %69 = vector.broadcast %cst_26 : f32 to vector<16x16xf32>
    %70 = arith.mulf %69, %54 : vector<16x16xf32>
    %71 = arith.addf %62, %70 : vector<16x16xf32>
    %72 = arith.addf %71, %68 : vector<16x16xf32>
    %73 = arith.subf %62, %68 : vector<16x16xf32>
    %c0_i32_27 = arith.constant 0 : i32
    %74 = vector.broadcast %c0_i32_27 : i32 to vector<16x16xi32>
    %75 = arith.cmpi eq, %56, %74 : vector<16x16xi32>
    %c1_i32_28 = arith.constant 1 : i32
    %76 = tpu.dynamic_rotate %72 by %c1_i32_28 dim 1 : vector<16x16xf32>, i32 -> vector<16x16xf32>
    %cst_29 = arith.constant 0.000000e+00 : f32
    %77 = vector.broadcast %cst_29 : f32 to vector<16x16xf32>
    %78 = arith.select %75, %77, %76 : vector<16x16xi1>, vector<16x16xf32>
    %c15_i32_30 = arith.constant 15 : i32
    %79 = vector.broadcast %c15_i32_30 : i32 to vector<16x16xi32>
    %80 = arith.cmpi eq, %56, %79 : vector<16x16xi32>
    %c15_i32_31 = arith.constant 15 : i32
    %81 = tpu.dynamic_rotate %72 by %c15_i32_31 dim 1 : vector<16x16xf32>, i32 -> vector<16x16xf32>
    %cst_32 = arith.constant 0.000000e+00 : f32
    %82 = vector.broadcast %cst_32 : f32 to vector<16x16xf32>
    %83 = arith.select %80, %82, %81 : vector<16x16xi1>, vector<16x16xf32>
    %c0_i32_33 = arith.constant 0 : i32
    %84 = vector.broadcast %c0_i32_33 : i32 to vector<16x16xi32>
    %85 = arith.cmpi eq, %56, %84 : vector<16x16xi32>
    %c1_i32_34 = arith.constant 1 : i32
    %86 = tpu.dynamic_rotate %73 by %c1_i32_34 dim 1 : vector<16x16xf32>, i32 -> vector<16x16xf32>
    %cst_35 = arith.constant 0.000000e+00 : f32
    %87 = vector.broadcast %cst_35 : f32 to vector<16x16xf32>
    %88 = arith.select %85, %87, %86 : vector<16x16xi1>, vector<16x16xf32>
    %c15_i32_36 = arith.constant 15 : i32
    %89 = vector.broadcast %c15_i32_36 : i32 to vector<16x16xi32>
    %90 = arith.cmpi eq, %56, %89 : vector<16x16xi32>
    %c15_i32_37 = arith.constant 15 : i32
    %91 = tpu.dynamic_rotate %73 by %c15_i32_37 dim 1 : vector<16x16xf32>, i32 -> vector<16x16xf32>
    %cst_38 = arith.constant 0.000000e+00 : f32
    %92 = vector.broadcast %cst_38 : f32 to vector<16x16xf32>
    %93 = arith.select %90, %92, %91 : vector<16x16xi1>, vector<16x16xf32>
    %94 = arith.subf %83, %78 : vector<16x16xf32>
    %cst_39 = arith.constant 2.000000e+00 : f32
    %95 = vector.broadcast %cst_39 : f32 to vector<16x16xf32>
    %96 = arith.mulf %95, %73 : vector<16x16xf32>
    %97 = arith.addf %88, %96 : vector<16x16xf32>
    %98 = arith.addf %97, %93 : vector<16x16xf32>
    %99 = math.absf %94 : vector<16x16xf32>
    %100 = math.absf %98 : vector<16x16xf32>
    %101 = arith.addf %99, %100 : vector<16x16xf32>
    %c1_40 = arith.constant 1 : index
    %c0_41 = arith.constant 0 : index
    %c0_42 = arith.constant 0 : index
    %102 = vector.load %arg3[%c1_40, %c0_41, %c0_42] : memref<2x16x16xf32, #tpu.memory_space<vmem>>, vector<1x16x16xf32>
    %103 = vector.shape_cast %102 : vector<1x16x16xf32> to vector<16x16xf32>
    %104 = vector.shape_cast %101 : vector<16x16xf32> to vector<1x16x16xf32>
    tpu.vector_store %arg3[%c1_40, %c0_41, %c0_42], %104 {strides = array<i32>} : memref<2x16x16xf32, #tpu.memory_space<vmem>>, vector<1x16x16xf32>,
    return
  }
  func.func @transform_0(%arg0: i32, %arg1: i32) -> (i32, i32, i32) {
    %c0_i32 = arith.constant 0 : i32
    %c0_i32_0 = arith.constant 0 : i32
    return %arg0, %arg1, %c0_i32 : i32, i32, i32
  }
  func.func @transform_1(%arg0: i32, %arg1: i32) -> (i32, i32, i32) {
    %c0_i32 = arith.constant 0 : i32
    %c0_i32_0 = arith.constant 0 : i32
    return %arg0, %arg1, %c0_i32 : i32, i32, i32
  }
}

</mosaic_0001>

<bundles_post_ra>
// kernel: tpu_custom_call.1
= control target key start
LH: loop header
LB: loop body
LE: loop exit
PB: predicated region body
PF: predicated region fallthrough
CT: control target
= control target key end

     0   :  { %6 = vsyncpa [#allocation3], 0  ;;  %s438_s0 = inlined_call_operand.hbm [shape: f32[2,16,16], index: 0, kind: input, shape index: {}]   ;;  %s439_s1 = inlined_call_operand.hbm [shape: f32[2,16,16], index: 1, kind: output, shape index: {}]  }
   0x1   :  { %7 = vsyncpa [#allocation4], 0  ;;  %s12_s8 = sshll.u32 %s438_s0, 4  ;;  %s316_s9 = smov [#allocation2]   ;;  %s13_s8 = int_to_ptr.hbm [resolvable:$true] %s12_s8 }
   0x2   :  { %s14_s10 = sshll.u32 %s316_s9, 4  ;;  %s317_s11 = smov 128   ;;  %s15_s10 = int_to_ptr.vmem [resolvable:$true] %s14_s10 }
   0x3   :  { %s318_s12 = smov 8  }
   0x4   :  { %20 = dma.hbm_to_vmem [thread:$0]  %s13_s8, 512, %s15_s10, [#allocation3], %s317_s11, %s317_s11, %s318_s12  }
   0x5   :  { %312 = dma.done.wait [#allocation3], 512  }
   0x6   :  { %313 = vsyncadd [#allocation3], 4294966784  ;;  %v27_v0 = vlaneseq  ;;  %v139_v2 = vld [vmem:[#allocation2 + $0x10] sm:$0xff]  ;;  %v140_v3 = vld [vmem:[#allocation2 + $0x18] sm:$0xff]  ;;  %s319_s0 = smov 16   ;;  %vm59_vm4 = vcmask 1047680  }
   0x7   :  { %v25_v4 = vld [vmem:[#allocation2] sm:$0xff]  ;;  %v141_v6 = vrot.slane %v139_v2, 7  ;;  %v142_v7 = vrot.slane %v140_v3, 7  ;;  %v147_v8 = vrot.slane %v139_v2, 1  ;;  %v148_v9 = vrot.slane %v140_v3, 1  ;;  %v26_v10 = vld [vmem:[#allocation2 + $0x8] sm:$0xff] }
   0x8   :  { %v28_v1 = vshrl.u32 %v27_v0, 7  ;;  %v34_v11 = vrot.slane %v25_v4, 7  ;;  %v35_v12 = vrot.slane %v26_v10, 7  ;;  %v43_v13 = vrot.slane %v25_v4, 1  ;;  %s320_s13 = smov 113   ;;  %s321_s14 = smov 127  }
   0x9   :  { %v44_v14 = vrot.slane %v26_v10, 1  ;;  %v50_v25 = vmul.f32 2.0, %v25_v4  ;;  %v51_v29 = vmul.f32 2.0, %v26_v10  ;;  %v154_v34 = vmul.f32 2.0, %v140_v3  ;;  %s322_s15 = smov [#allocation5]   ;;  %s244_s19 = sshll.u32 %s439_s1, 4  ;;  %s245_s19 = int_to_ptr.hbm [resolvable:$true] %s244_s19 }
   0xa   :  { %vm32_vm0 = vcmp.eq.s32.totalorder %v28_v1, 0  ;;  %vm36_vm1 = vcmp.lt.s32.totalorder %v28_v1, 1  ;;  %vm45_vm2 = vcmp.lt.s32.totalorder %v28_v1, 7  ;;  %v29_v5 = vadd.s32 8, %v28_v1  ;;  %s242_s16 = sshll.u32 %s322_s15, 4  ;;  %s243_s16 = int_to_ptr.vmem [resolvable:$true] %s242_s16 }
   0xb   :  { %v144_v15 = vsel %vm36_vm1, %v142_v7, %v141_v6  ;;  %v149_v16 = vsel %vm45_vm2, %v147_v8, %v148_v9  ;;  %v38_v18 = vsel %vm36_vm1, %v35_v12, %v34_v11  ;;  %v46_v19 = vsel %vm45_vm2, %v43_v13, %v44_v14 }
   0xc   :  { %v145_v17 = vsel %vm32_vm0, 0.0, %v144_v15  ;;  %v39_v21 = vsel %vm32_vm0, 0.0, %v38_v18  ;;  %vm42_vm3 = vcmp.eq.s32.totalorder %v29_v5, 15  ;;  %v150_v22 = vsel %vm45_vm2, %v148_v9, %v147_v8 }
   0xd   :  { %v345_v20 = vsub.f32 %v145_v17, %v149_v16  ;;  %v349_v23 = vsub.f32 %v39_v21, %v46_v19  ;;  %v47_v24 = vsel %vm45_vm2, %v44_v14, %v43_v13  ;;  %v143_v26 = vsel %vm36_vm1, %v141_v6, %v142_v7 }
   0xe   :  { %v152_v27 = vsel %vm42_vm3, 0.0, %v150_v22  ;;  %v52_v28 = vadd.f32 %v50_v25, %v39_v21  ;;  %v37_v30 = vsel %vm36_vm1, %v34_v11, %v35_v12  ;;  %v49_v31 = vsel %vm42_vm3, 0.0, %v47_v24 }
   0xf   :  { %191 = vrot.lane.b32.xlu1 %v345_v20, %s319_s0  ;;  %91 = vrot.lane.b32.xlu0 %v349_v23, %s319_s0  ;;  %v360_v33 = vsub.f32 %v143_v26, %v152_v27  ;;  %v362_v35 = vsub.f32 %v37_v30, %v49_v31  ;;  %v53_v36 = vadd.f32 %v51_v29, %v37_v30  ;;  %v153_v37 = vmul.f32 2.0, %v139_v2 }
  0x10   :  { %v358_v32 = vadd.f32 %v52_v28, %v46_v19  ;;  %v156_v38 = vadd.f32 %v154_v34, %v143_v26  ;;  %vm135_vm7 = vcmask 130048  }
  0x11   :  { %v55_v39 = vadd.f32 %v53_v36, %v49_v31  ;;  %v155_v40 = vadd.f32 %v153_v37, %v145_v17  ;;  %v124_v19 = vmul.f32 2.0, %v362_v35  ;;  %v123_v31 = vmul.f32 2.0, %v349_v23 }
  0x12   :  { %60 = vrot.lane.b32.xlu2 %v358_v32, %s319_s0  ;;  %v158_v41 = vadd.f32 %v156_v38, %v152_v27 }
  0x13   :  { %v157_v42 = vadd.f32 %v155_v40, %v149_v16  ;;  %v31_v16 = vand.u32 127, %v27_v0 }
  0x15   :  { %vm58_vm5 = vcmp.eq.s32.totalorder %v31_v16, 0  ;;  %vm82_vm6 = vcmp.eq.s32.totalorder %v31_v16, 15 }
  0x17   :  { %194 = vrot.lane.b32.xlu1 %v360_v33, %s319_s0  ;;  %94 = vrot.lane.b32.xlu0 %v362_v35, %s319_s0 }
  0x1a   :  { %63 = vrot.lane.b32.xlu2 %v55_v39, %s319_s0 }
  0x1f   :  { %164 = vrot.lane.b32.xlu1 %v158_v41, %s319_s0  ;;  %161 = vrot.lane.b32.xlu0 %v157_v42, %s319_s0 }
  0x6c   :  { %v61_v43 = vpop.permute.xlu2 %60 }
  0x6d   :  { %v62_v58 = vsel %vm59_vm4, %v61_v43, %v358_v32 }
  0x74   :  { %v64_v48 = vpop.permute.xlu2 %63 }
  0x75   :  { %v65_v49 = vsel %vm59_vm4, %v64_v48, %v55_v39 }
  0x81   :  { %v192_v44 = vpop.permute.xlu1 %191  ;;  %v92_v45 = vpop.permute.xlu0 %91 }
  0x82   :  { %v193_v46 = vsel %vm59_vm4, %v192_v44, %v345_v20  ;;  %v93_v47 = vsel %vm59_vm4, %v92_v45, %v349_v23  ;;  %v223_v45 = vmul.f32 2.0, %v345_v20 }
  0x83   :  { %197 = vrot.lane.b32.xlu1 %v193_v46, %s319_s0  ;;  %97 = vrot.lane.b32.xlu2 %v93_v47, %s319_s0 }
  0x89   :  { %v195_v50 = vpop.permute.xlu1 %194  ;;  %v95_v51 = vpop.permute.xlu0 %94 }
  0x8a   :  { %v196_v52 = vsel %vm59_vm4, %v195_v50, %v360_v33  ;;  %v96_v53 = vsel %vm59_vm4, %v95_v51, %v362_v35 }
  0x8b   :  { %68 = vrot.lane.b32.xlu1 %v65_v49, %s319_s0  ;;  %99 = vrot.lane.b32.xlu0 %v96_v53, %s319_s0 }
  0x8c   :  { %199 = vrot.lane.b32.xlu2 %v196_v52, %s319_s0 }
  0x91   :  { %v165_v54 = vpop.permute.xlu1 %164  ;;  %v162_v56 = vpop.permute.xlu0 %161 }
  0x92   :  { %v166_v55 = vsel %vm59_vm4, %v165_v54, %v158_v41  ;;  %v163_v57 = vsel %vm59_vm4, %v162_v56, %v157_v42 }
  0x93   :  { %169 = vrot.lane.b32.xlu0 %v166_v55, %s319_s0 }
  0x94   :  { %167 = vrot.lane.b32.xlu2 %v163_v57, %s319_s0 }
  0x9b   :  { %66 = vrot.lane.b32.xlu0 %v62_v58, %s319_s0 }
  0xdd   :  { %v98_v59 = vpop.permute.xlu2 %97 }
  0xde   :  { %v101_v60 = vsel %vm59_vm4, %v98_v59, %v349_v23 }
  0xdf   :  { %105 = vrot.lane.b32.xlu1 %v101_v60, %s320_s13 }
  0xe6   :  { %v200_v61 = vpop.permute.xlu2 %199 }
  0xe7   :  { %v202_v62 = vsel %vm59_vm4, %v200_v61, %v360_v33 }
  0xe8   :  { %207 = vrot.lane.b32.xlu1 %v202_v62, %s320_s13 }
  0xee   :  { %v168_v10 = vpop.permute.xlu2 %167 }
  0xef   :  { %v171_v11 = vsel %vm59_vm4, %v168_v10, %v157_v42 }
  0xf5   :  { %v198_v63 = vpop.permute.xlu1 %197 }
  0xf6   :  { %v201_v1 = vsel %vm59_vm4, %v198_v63, %v345_v20  ;;  %v224_v20 = vmul.f32 2.0, %v360_v33 }
  0xf7   :  { %205 = vrot.lane.b32.xlu0 %v201_v1, %s320_s13 }
  0xfd   :  { %v100_v2 = vpop.permute.xlu0 %99  ;;  %v69_v4 = vpop.permute.xlu1 %68 }
  0xfe   :  { %v102_v3 = vsel %vm59_vm4, %v100_v2, %v362_v35  ;;  %v71_v5 = vsel %vm59_vm4, %v69_v4, %v55_v39 }
  0xff   :  { %113 = vrot.lane.b32.xlu0 %v101_v60, %s321_s14  ;;  %107 = vrot.lane.b32.xlu2 %v102_v3, %s320_s13 }
 0x100   :  { %115 = vrot.lane.b32.xlu1 %v102_v3, %s321_s14 }
 0x105   :  { %v170_v6 = vpop.permute.xlu0 %169 }
 0x106   :  { %v172_v8 = vsel %vm59_vm4, %v170_v6, %v158_v41 }
 0x107   :  { %76 = vrot.lane.b32.xlu0 %v71_v5, %s320_s13  ;;  %85 = vrot.lane.b32.xlu2 %v71_v5, %s321_s14 }
 0x10d   :  { %v67_v7 = vpop.permute.xlu0 %66 }
 0x10e   :  { %v70_v9 = vsel %vm59_vm4, %v67_v7, %v358_v32 }
 0x10f   :  { %177 = vrot.lane.b32.xlu0 %v172_v8, %s320_s13  ;;  %74 = vrot.lane.b32.xlu2 %v70_v9, %s320_s13 }
 0x110   :  { %83 = vrot.lane.b32.xlu1 %v70_v9, %s321_s14 }
 0x117   :  { %213 = vrot.lane.b32.xlu0 %v201_v1, %s321_s14  ;;  %175 = vrot.lane.b32.xlu2 %v171_v11, %s320_s13 }
 0x118   :  { %183 = vrot.lane.b32.xlu1 %v171_v11, %s321_s14 }
 0x11f   :  { %185 = vrot.lane.b32.xlu2 %v172_v8, %s321_s14 }
 0x120   :  { %215 = vrot.lane.b32.xlu1 %v202_v62, %s321_s14 }
 0x151   :  { %v106_v12 = vpop.permute.xlu1 %105 }
 0x152   :  { %v111_v32 = vsel %vm58_vm5, 0.0, %v106_v12 }
 0x153   :  { %v125_v38 = vadd.f32 %v123_v31, %v111_v32 }
 0x159   :  { %v108_v13 = vpop.permute.xlu2 %107 }
 0x15a   :  { %v208_v15 = vpop.permute.xlu1 %207  ;;  %v112_v22 = vsel %vm58_vm5, 0.0, %v108_v13 }
 0x15b   :  { %v126_v25 = vadd.f32 %v124_v19, %v112_v22  ;;  %v212_v61 = vsel %vm58_vm5, 0.0, %v208_v15 }
 0x15c   :  { %v226_v2 = vadd.f32 %v224_v20, %v212_v61 }
 0x161   :  { %v86_v17 = vpop.permute.xlu2 %85 }
 0x162   :  { %v90_v28 = vsel %vm82_vm6, 0.0, %v86_v17 }
 0x169   :  { %v206_v14 = vpop.permute.xlu0 %205  ;;  %v75_v29 = vpop.permute.xlu2 %74 }
 0x16a   :  { %v80_v42 = vsel %vm58_vm5, 0.0, %v75_v29  ;;  %v211_v46 = vsel %vm58_vm5, 0.0, %v206_v14 }
 0x16b   :  { %v225_v50 = vadd.f32 %v223_v45, %v211_v46 }
 0x171   :  { %v114_v18 = vpop.permute.xlu0 %113  ;;  %v176_v44 = vpop.permute.xlu2 %175 }
 0x172   :  { %v116_v21 = vpop.permute.xlu1 %115  ;;  %v119_v36 = vsel %vm82_vm6, 0.0, %v114_v18  ;;  %v181_v54 = vsel %vm58_vm5, 0.0, %v176_v44 }
 0x173   :  { %v120_v24 = vsel %vm82_vm6, 0.0, %v116_v21  ;;  %v127_v40 = vadd.f32 %v125_v38, %v119_v36 }
 0x174   :  { %v128_v26 = vadd.f32 %v126_v25, %v120_v24 }
 0x175   :  { %v131_v47 = vand.u32 2147483647, %v127_v40 }
 0x176   :  { %v132_v34 = vand.u32 2147483647, %v128_v26 }
 0x179   :  { %v77_v27 = vpop.permute.xlu0 %76  ;;  %v186_v59 = vpop.permute.xlu2 %185 }
 0x17a   :  { %v81_v30 = vsel %vm58_vm5, 0.0, %v77_v27  ;;  %v190_v1 = vsel %vm82_vm6, 0.0, %v186_v59 }
 0x17b   :  { %v122_v0 = vsub.f32 %v90_v28, %v81_v30 }
 0x17d   :  { %v130_v35 = vand.u32 2147483647, %v122_v0 }
 0x17f   :  { %v134_v37 = vadd.f32 %v132_v34, %v130_v35 }
 0x181   :  { %137 = vst.msk [vmem:[#allocation5 + $0x8] sm:$0xff] %vm135_vm7, %v134_v37  ;;  %v178_v39 = vpop.permute.xlu0 %177 }
 0x182   :  { %v84_v41 = vpop.permute.xlu1 %83  ;;  %v182_v62 = vsel %vm58_vm5, 0.0, %v178_v39 }
 0x183   :  { %v89_v43 = vsel %vm82_vm6, 0.0, %v84_v41  ;;  %v222_v3 = vsub.f32 %v190_v1, %v182_v62 }
 0x184   :  { %v121_v23 = vsub.f32 %v89_v43, %v80_v42 }
 0x185   :  { %v230_v33 = vand.u32 2147483647, %v222_v3 }
 0x186   :  { %v129_v48 = vand.u32 2147483647, %v121_v23 }
 0x188   :  { %v133_v49 = vadd.f32 %v131_v47, %v129_v48 }
 0x189   :  { %v214_v51 = vpop.permute.xlu0 %213 }
 0x18a   :  { %136 = vst.msk [vmem:[#allocation5] sm:$0xff] %vm135_vm7, %v133_v49  ;;  %v219_v52 = vsel %vm82_vm6, 0.0, %v214_v51  ;;  %v184_v53 = vpop.permute.xlu1 %183 }
 0x18b   :  { %v227_v55 = vadd.f32 %v225_v50, %v219_v52  ;;  %v189_v56 = vsel %vm82_vm6, 0.0, %v184_v53 }
 0x18c   :  { %v221_v57 = vsub.f32 %v189_v56, %v181_v54 }
 0x18d   :  { %v231_v58 = vand.u32 2147483647, %v227_v55 }
 0x18e   :  { %v229_v60 = vand.u32 2147483647, %v221_v57 }
 0x190   :  { %v233_v63 = vadd.f32 %v231_v58, %v229_v60 }
 0x192   :  { %236 = vst.msk [vmem:[#allocation5 + $0x10] sm:$0xff] %vm135_vm7, %v233_v63  ;;  %v216_v4 = vpop.permute.xlu1 %215 }
 0x193   :  { %v220_v5 = vsel %vm82_vm6, 0.0, %v216_v4 }
 0x194   :  { %v228_v6 = vadd.f32 %v226_v2, %v220_v5 }
 0x196   :  { %v232_v7 = vand.u32 2147483647, %v228_v6 }
 0x198   :  { %v234_v8 = vadd.f32 %v232_v7, %v230_v33 }
 0x19a   :  { %237 = vst.msk [vmem:[#allocation5 + $0x18] sm:$0xff] %vm135_vm7, %v234_v8 }
 0x19b   :  { %250 = dma.vmem_to_hbm [thread:$0]  %s243_s16, 512, %s245_s19, [#allocation4], %s317_s11, %s317_s11, %s318_s12  }
 0x19c   :  { %314 = dma.done.wait [#allocation4], 512  }
 0x19d   :  { %315 = vsyncadd [#allocation4], 4294966784 }
 0x19e   :  { %255 = vsyncpa [#allocation3], 1 }
 0x19f   :  { %256 = vsyncpa [#allocation4], 1 }

</bundles_post_ra>
